<compile_context>
chip_gen: v7x
topology: tpu7x:2x2x1
jax: 0.10.0
libtpu: 0.0.40
codegen_flags: <defaults>
</compile_context>

<pallas_src>
import functools
import math

import jax
import jax.numpy as jnp
from jax.experimental import pallas as pl
from jax.experimental.pallas import tpu as pltpu


# ---------------------------------------------------------------------------
# Kernel bodies
# ---------------------------------------------------------------------------
def _copy_kernel(x_ref, o_ref):
    # The input DMA already delivered exactly the kept lane window.
    o_ref[...] = x_ref[...]


def _slice_kernel(x_ref, o_ref, *, col_start, width):
    # Ref-view slice: only the kept lane window is loaded into vregs; the
    # dropped columns never leave VMEM.
    o_ref[...] = x_ref[:, col_start:col_start + width]


# ---------------------------------------------------------------------------
# Helpers
# ---------------------------------------------------------------------------
def _resolve_slice(N, number, inverse, remove_mode):
    """Exact Python/torch slice semantics (including clamping)."""
    if inverse and remove_mode:
        sl = slice(None, -number)          # x[:, :-number, :]
    elif inverse and not remove_mode:
        sl = slice(-number, None)          # x[:, -number:, :]
    elif remove_mode:
        sl = slice(number, None)           # x[:, number:, :]
    else:
        sl = slice(None, number)           # x[:, :number, :]
    start, stop, _ = sl.indices(N)
    return start, max(0, stop - start)


def _sublane_multiple(dtype):
    bits = jnp.dtype(dtype).itemsize * 8
    return max(8, 256 // bits)             # f32: 8, bf16: 16, int8/fp8: 32


def _vmem_plan():
    """(vmem_limit_bytes, per-input-block byte budget) per TPU generation."""
    try:
        cap = int(pltpu.get_tpu_info().vmem_capacity_bytes)
    except Exception:
        cap = 0
    # v5e/v6e (128 MiB physical) -> 64 MiB scoped / ~8 MiB blocks.
    # v7x     (64 MiB physical)  -> 32 MiB scoped / ~4 MiB blocks.
    limit = min(64 << 20, max(16 << 20, cap // 2)) if cap else (32 << 20)
    return limit, limit // 8


def _largest_aligned_divisor(g, max_lanes):
    """Largest divisor of g that is a multiple of 128 and <= max_lanes."""
    if g <= 0 or g % 128 != 0 or max_lanes < 128:
        return None
    q = g // 128
    best = None
    d = 1
    while d * d <= q:
        if q % d == 0:
            for f in (d, q // d):
                cw = 128 * f
                if cw <= max_lanes and (best is None or cw > best):
                    best = cw
        d += 1
    return best


def _pick_batch_block(B, row_bytes, budget, sub, min_steps=8,
                      min_block_bytes=1 << 20):
    bb = min(B, max(1, budget // max(1, row_bytes)))
    if bb < B:
        bb = max(sub, (bb // sub) * sub)
        bb = min(bb, B)
    # Prefer >= min_steps grid steps (feeds both v7x TensorCores, deepens the
    # read/write DMA pipeline) as long as blocks stay >= ~1 MiB.
    cap = ((-(-B // min_steps)) // sub) * sub
    if sub <= cap < bb and cap * row_bytes >= min_block_bytes:
        bb = cap
    return bb


# ---------------------------------------------------------------------------
# Wrapper
# ---------------------------------------------------------------------------
def token_filter(x, number=1, inverse=False, remove_mode=True, *,
                 block_budget_bytes=None):
    """Pallas TPU equivalent of TokenFilter.forward for x:(B, N, D)."""
    B, N, D = x.shape
    start, n_out = _resolve_slice(N, number, inverse, remove_mode)

    # Degenerate cases: no kernel needed (and Mosaic rejects 0-width blocks).
    if n_out == N:
        return x
    if n_out == 0:
        return jnp.zeros((B, 0, D), x.dtype)

    itemsize = jnp.dtype(x.dtype).itemsize
    sub = _sublane_multiple(x.dtype)
    vmem_limit, budget = _vmem_plan()
    if block_budget_bytes is not None:
        budget = int(block_budget_bytes)

    row_w = N * D            # flattened input row width (lanes)
    out_w = n_out * D        # flattened output row width (lanes)
    col_start = start * D    # lane offset of the kept window

    # Lane-dense layout plumbing (free reshape of contiguous dims).
    x2 = x.reshape(B, row_w)

    rows_min = min(B, sub)
    cw = _largest_aligned_divisor(
        out_w if col_start == 0 else math.gcd(col_start, out_w),
        max_lanes=max(128, budget // max(1, rows_min * itemsize)))

    row_bytes = row_w * itemsize
    full_row_fits = rows_min * row_bytes <= budget

    use_dma_slice = cw is not None and (
        col_start == 0                      # strictly better: reads only kept
        or not full_row_fits                # big aligned rows: must lane-tile
        or cw * itemsize * B >= budget)     # chunks big enough to amortize

    if use_dma_slice:
        # Strategy (a): the input DMA delivers exactly the kept window.
        bb = _pick_batch_block(B, cw * itemsize, budget, sub)
        n_col = out_w // cw
        col_block = col_start // cw
        grid = (-(-B // bb), n_col)
        in_specs = [pl.BlockSpec((bb, cw),
                                 lambda i, j, cb=col_block: (i, cb + j))]
        out_specs = pl.BlockSpec((bb, cw), lambda i, j: (i, j))
        kernel = _copy_kernel
        dims = ("parallel", "parallel")
        bytes_read = B * out_w * itemsize
        block_bytes = 2 * bb * cw * itemsize
    else:
        # Strategy (b): whole rows in, ref-view slice, lane-dense output.
        bb = _pick_batch_block(B, row_bytes, budget, sub)
        grid = (-(-B // bb),)
        in_specs = [pl.BlockSpec((bb, row_w), lambda i: (i, 0))]
        out_specs = pl.BlockSpec((bb, out_w), lambda i: (i, 0))
        kernel = functools.partial(_slice_kernel, col_start=col_start,
                                   width=out_w)
        dims = ("parallel",)
        bytes_read = B * row_w * itemsize
        block_bytes = bb * (row_w + out_w) * itemsize

    # Make sure the scoped VMEM limit covers the double-buffered blocks.
    vmem_limit = max(vmem_limit, 2 * block_bytes + (2 << 20))
    # TODO(synk): rows too large for VMEM whose lane offset is NOT 128-aligned
    # would need a manual-DMA (memory_space=pl.ANY) column-tiled path; such
    # shapes do not occur for transformer token tensors.

    out2 = pl.pallas_call(
        kernel,
        out_shape=jax.ShapeDtypeStruct((B, out_w), x.dtype),
        grid=grid,
        in_specs=in_specs,
        out_specs=out_specs,
        compiler_params=pltpu.CompilerParams(
            dimension_semantics=dims,
            vmem_limit_bytes=int(vmem_limit),
        ),
        cost_estimate=pl.CostEstimate(
            flops=0, transcendentals=0,
            bytes_accessed=int(bytes_read + B * out_w * itemsize)),
    )(x2)

    # TODO(synk): stand-alone this caps at XLA's slice-copy bandwidth; the
    # real payoff is fusing the downstream consumer (projection / layernorm)
    # into this pallas_call so the HBM read feeds compute.
    return out2.reshape(B, n_out, D)


if __name__ == "__main__":
    key = jax.random.PRNGKey(0)

    # ViT-like token tensor: batch=2, 1 cls token + 8 patch tokens, hidden=32.
    B, N, D = 2, 9, 32
    x = jax.random.normal(key, (B, N, D), dtype=jnp.float32)

    # Default TokenFilter(): remove cls -> x[:, 1:, :]  (ref-slice path).
    out = jax.block_until_ready(token_filter(x, 1, False, True))
    assert out.shape == (B, N - 1, D), out.shape
    assert jnp.array_equal(out, x[:, 1:, :]), "remove-cls mismatch"

    # Other three modes.
    assert jnp.array_equal(token_filter(x, 1, True, True), x[:, :-1, :])   # DMA-slice (col_start==0)
    assert jnp.array_equal(token_filter(x, 2, True, False), x[:, -2:, :])  # ref-slice
    assert jnp.array_equal(token_filter(x, 3, False, False), x[:, :3, :])  # ref-slice, out_w % 128 != 0

    # 128-aligned nonzero offset with a tiny budget -> DMA-slice + lane tiling.
    xa = jax.random.normal(key, (4, 6, 128), dtype=jnp.float32)
    assert jnp.array_equal(
        token_filter(xa, 2, False, True, block_budget_bytes=4096), xa[:, 2:, :])

    # Partial batch blocks (bb does not divide B) on the ref-slice path.
    xb = jax.random.normal(key, (12, 4, 128), dtype=jnp.float32)
    assert jnp.array_equal(
        token_filter(xb, 1, False, True, block_budget_bytes=16384), xb[:, 1:, :])

    # bf16 (dtype-native sublane multiple) path.
    xc = jax.random.normal(key, (8, 9, 256), dtype=jnp.bfloat16)
    assert jnp.array_equal(token_filter(xc, 1, False, True), xc[:, 1:, :])

    # Degenerate cases: identity and empty (no kernel launch).
    assert token_filter(x, 0, False, True).shape == (B, N, D)
    assert token_filter(x, N, False, True).shape == (B, 0, D)

    jax.block_until_ready(out)
    print("KERNEL_OK")
</pallas_src>

<mosaic_0001>
module attributes {stable_mosaic.version = 11 : i64} {
  func.func @_slice_kernel(%arg0: i32, %arg1: memref<2x288xf32, #tpu.memory_space<vmem>>, %arg2: memref<2x256xf32, #tpu.memory_space<vmem>>) attributes {dimension_semantics = [#tpu.dimension_semantics<parallel>], iteration_bounds = array<i64: 1>, scalar_prefetch = 0 : i64, scratch_operands = 0 : i64, tpu.core_type = #tpu.core_type<tc>, window_params = [{transform_indices = @transform_0, window_bounds = array<i64: 2, 288>}, {transform_indices = @transform_1, window_bounds = array<i64: 2, 256>}]} {
    %c0 = arith.constant 0 : index
    %c32 = arith.constant 32 : index
    %0 = vector.load %arg1[%c0, %c32] : memref<2x288xf32, #tpu.memory_space<vmem>>, vector<2x256xf32>
    %c0_0 = arith.constant 0 : index
    %c0_1 = arith.constant 0 : index
    %1 = vector.load %arg2[%c0_0, %c0_1] : memref<2x256xf32, #tpu.memory_space<vmem>>, vector<2x256xf32>
    tpu.vector_store %arg2[%c0_0, %c0_1], %0 {strides = array<i32>} : memref<2x256xf32, #tpu.memory_space<vmem>>, vector<2x256xf32>,
    return
  }
  func.func @transform_0(%arg0: i32) -> (i32, i32) {
    %c0_i32 = arith.constant 0 : i32
    %c0_i32_0 = arith.constant 0 : i32
    return %arg0, %c0_i32 : i32, i32
  }
  func.func @transform_1(%arg0: i32) -> (i32, i32) {
    %c0_i32 = arith.constant 0 : i32
    %c0_i32_0 = arith.constant 0 : i32
    return %arg0, %c0_i32 : i32, i32
  }
}

</mosaic_0001>

<bundles_post_ra>
// kernel: tpu_custom_call.1
= control target key start
LH: loop header
LB: loop body
LE: loop exit
PB: predicated region body
PF: predicated region fallthrough
CT: control target
= control target key end

     0   :  { %6 = vsyncpa [#allocation3], 0  ;;  %s133_s0 = inlined_call_operand.hbm [shape: f32[2,288], index: 0, kind: input, shape index: {}]   ;;  %s134_s1 = inlined_call_operand.hbm [shape: f32[2,256], index: 1, kind: output, shape index: {}]  }
   0x1   :  { %7 = vsyncpa [#allocation4], 0  ;;  %s96_s6 = smov [#allocation2]   ;;  %s48_s10 = scalar_lea.hbm %s133_s0, 96 }
   0x2   :  { %s14_s7 = sshll.u32 %s96_s6, 4  ;;  %p49_p0 = scmp.ne.s32.totalorder %s133_s0, %s48_s10  ;;  %s15_s7 = int_to_ptr.vmem [resolvable:$true] %s14_s7 }
   0x3   :  { %p52_p1 = scmp.lt.u32.totalorder %s48_s10, %s133_s0 }
   0x5   :  { %p54_p2 = pnand %p52_p1, %p49_p0 }
   0x7   :  { %57 = shalt.err (!%p54_p2)
}
   0x8   :  { %s58_s15 = scalar_lea.vmem %s15_s7, 96  ;;  %p63_p4 = scmp.lt.s32.totalorder %s15_s7, %s15_s7 }
   0x9   :  { %p59_p3 = scmp.ne.s32.totalorder %s15_s7, %s58_s15  ;;  %p64_p5 = scmp.lt.s32.totalorder %s58_s15, %s58_s15 }
   0xb   :  { %p65_p6 = por %p64_p5, %p63_p4 }
   0xd   :  { %p66_p7 = pnand %p65_p6, %p59_p3 }
   0xf   :  { %69 = shalt.err (!%p66_p7)
}
  0x10   :  { %17 = dma.hbm_to_vmem [thread:$0]  %s133_s0, 96, %s15_s7, [#allocation3]  }
  0x11   :  { %92 = dma.done.wait [#allocation3], 96  }
  0x12   :  { %93 = vsyncadd [#allocation3], 4294967200  ;;  %v21_v0 = vld [vmem:[#allocation2] sm:$0x3f]  ;;  %s97_s18 = smov 96   ;;  %s98_s19 = smov [#allocation5]  }
  0x13   :  { %23 = vrot.lane.b32.xlu0 %v21_v0, %s97_s18  ;;  %s36_s20 = sshll.u32 %s98_s19, 4  ;;  %vm26_vm0 = vcmask 785408   ;;  %s37_s20 = int_to_ptr.vmem [resolvable:$true] %s36_s20 }
  0x14   :  { %s70_s21 = scalar_lea.vmem %s37_s20, 64  ;;  %p75_p9 = scmp.lt.s32.totalorder %s37_s20, %s37_s20 }
  0x15   :  { %p71_p8 = scmp.ne.s32.totalorder %s37_s20, %s70_s21  ;;  %p76_p10 = scmp.lt.s32.totalorder %s70_s21, %s70_s21 }
  0x17   :  { %p77_p11 = por %p76_p10, %p75_p9 }
  0x19   :  { %p78_p12 = pnand %p77_p11, %p71_p8 }
  0x85   :  { %v24_v1 = vpop.permute.xlu0 %23 }
  0x86   :  { %v25_v2 = vrot.slane %v24_v1, 2 }
  0x88   :  { %v27_v3 = vsel %vm26_vm0, %v24_v1, %v25_v2 }
  0x89   :  { %29 = vst [vmem:[#allocation5] sm:$0xf] %v27_v3 }
  0x8a   :  { %81 = shalt.err (!%p78_p12)
}
  0x8b   :  { %s82_s23 = scalar_lea.hbm %s134_s1, 64 }
  0x8c   :  { %p83_p13 = scmp.ne.s32.totalorder %s134_s1, %s82_s23  ;;  %p86_p0 = scmp.lt.u32.totalorder %s82_s23, %s134_s1 }
  0x8e   :  { %p88_p1 = pnand %p86_p0, %p83_p13 }
  0x90   :  { %91 = shalt.err (!%p88_p1)
}
  0x91   :  { %39 = dma.vmem_to_hbm [thread:$0]  %s37_s20, 64, %s134_s1, [#allocation4]  }
  0x92   :  { %94 = dma.done.wait [#allocation4], 64  }
  0x93   :  { %95 = vsyncadd [#allocation4], 4294967232 }
  0x94   :  { %43 = vsyncpa [#allocation3], 1 }
  0x95   :  { %44 = vsyncpa [#allocation4], 1 }

</bundles_post_ra>
